<compile_context>
chip_gen: v7x
topology: tpu7x:2x2x1
jax: 0.10.0
libtpu: 0.0.40
codegen_flags: <defaults>
</compile_context>

<pallas_src>
import functools

import jax
import jax.numpy as jnp
from jax.experimental import pallas as pl
from jax.experimental.pallas import tpu as pltpu


def _round_up(n, m):
    return ((n + m - 1) // m) * m


def _dfc_kernel(alpha, x_ref, ct_ref, csq_ref, o_ref):
    """One batch tile of the soft cluster assignment.

    x_ref   : (TB, D)  feature tile
    ct_ref  : (D, K)   cluster centers, pre-transposed (resident)
    csq_ref : (1, K)   precomputed ||c_k||^2 (resident)
    o_ref   : (TB, K)  soft assignments
    """
    x = x_ref[...]                                             # (TB, D)

    # ||x - c||^2 = ||x||^2 + ||c||^2 - 2 x.c   (cross term on the MXU)
    x_sq = jnp.sum(x * x, axis=1, keepdims=True)               # (TB, 1)
    xc = jnp.dot(x, ct_ref[...], preferred_element_type=jnp.float32)  # (TB, K)
    norm_sq = jnp.maximum(x_sq + csq_ref[...] - 2.0 * xc, 0.0)

    # Student's-t numerator, exactly as the reference: 1 / (1 + ||x-c||^2/alpha)
    # (alpha folded as a trace-time constant).
    numerator = 1.0 / (1.0 + norm_sq * (1.0 / alpha))          # (TB, K)
    denom = jnp.sum(numerator, axis=1, keepdims=True)          # (TB, 1)
    inv_denom = pl.reciprocal(denom, approx=False)             # exact, (TB, 1)
    o_ref[...] = numerator * inv_denom


def dfc_forward(batch, cluster_centers, alpha=1.0, block_b=1024):
    """Pallas wrapper: batch-tiled grid, centers resident, no padded copies."""
    batch = jnp.asarray(batch, jnp.float32)
    cluster_centers = jnp.asarray(cluster_centers, jnp.float32)
    B, D = batch.shape
    K, D2 = cluster_centers.shape
    assert D == D2

    # Batch tile: multiple of 8 sublanes, aim for >=4 tiles so the "parallel"
    # axis can shard across both v7x TensorCores; cap at block_b (1024 rows is
    # a good fit for 128 MiB v5e/v6e VMEM and still small on 64 MiB v7x).
    TB = max(8, min(block_b, _round_up(pl.cdiv(B, 4), 8)))
    grid = (pl.cdiv(B, TB),)

    # Tiny one-off prep in XLA: transposed centers + squared norms.
    ct = cluster_centers.T                                        # (D, K)
    c_sq = jnp.sum(cluster_centers * cluster_centers, axis=1)[None, :]  # (1, K)

    # TODO(synk): for very large D*K (>~ a quarter of VMEM) add a K-tiling
    # grid axis with a VMEM-scratch denominator accumulator; resident centers
    # are fine for DFC-typical shapes.
    cost = pl.CostEstimate(
        flops=2 * B * K * D,
        transcendentals=0,
        bytes_accessed=4 * (B * D + D * K + K + B * K),
    )

    out = pl.pallas_call(
        functools.partial(_dfc_kernel, float(alpha)),
        out_shape=jax.ShapeDtypeStruct((B, K), jnp.float32),
        grid=grid,
        in_specs=[
            pl.BlockSpec((TB, D), lambda i: (i, 0)),   # x tile (pipelined)
            pl.BlockSpec((D, K), lambda i: (0, 0)),    # centers^T (resident)
            pl.BlockSpec((1, K), lambda i: (0, 0)),    # ||c||^2 (resident)
        ],
        out_specs=pl.BlockSpec((TB, K), lambda i: (i, 0)),
        compiler_params=pltpu.CompilerParams(
            dimension_semantics=("parallel",)),
        cost_estimate=cost,
    )(batch, ct, c_sq)
    return out


def xavier_uniform(key, shape):
    """Deterministic equivalent of nn.init.xavier_uniform_ (gain=1)."""
    fan_out, fan_in = shape  # (cluster_number, embedding_dimension)
    bound = jnp.sqrt(6.0 / (fan_in + fan_out))
    return jax.random.uniform(key, shape, jnp.float32, -bound, bound)


def reference_forward(batch, cluster_centers, alpha=1.0):
    """Pure-JAX reference mirroring the PyTorch module exactly."""
    ns = jnp.sum((batch[:, None, :] - cluster_centers[None, :, :]) ** 2, axis=2)
    num = 1.0 / (1.0 + ns / alpha)
    return num / jnp.sum(num, axis=1, keepdims=True)


if __name__ == "__main__":
    key = jax.random.PRNGKey(0)
    k_x, k_c = jax.random.split(key)

    batch_size = 8
    hidden_dimension = 32   # embedding dimension
    cluster_number = 4
    alpha = 1.0

    x = jax.random.normal(k_x, (batch_size, hidden_dimension), dtype=jnp.float32)
    cluster_centers = xavier_uniform(k_c, (cluster_number, hidden_dimension))

    out = dfc_forward(x, cluster_centers, alpha)
    out = jax.block_until_ready(out)

    ref = reference_forward(x, cluster_centers, alpha)
    assert out.shape == (batch_size, cluster_number)
    assert jnp.allclose(out, ref, atol=1e-5, rtol=1e-5)
    # rows sum to 1 (soft assignment)
    assert jnp.allclose(jnp.sum(out, axis=1), jnp.ones(batch_size), atol=1e-5)

    print("KERNEL_OK")
</pallas_src>

<mosaic_0001>
module attributes {stable_mosaic.version = 11 : i64} {
  func.func @_dfc_kernel(%arg0: i32, %arg1: memref<8x32xf32, #tpu.memory_space<vmem>>, %arg2: memref<32x4xf32, #tpu.memory_space<vmem>>, %arg3: memref<1x4xf32, #tpu.memory_space<vmem>>, %arg4: memref<8x4xf32, #tpu.memory_space<vmem>>) attributes {dimension_semantics = [#tpu.dimension_semantics<parallel>], iteration_bounds = array<i64: 1>, scalar_prefetch = 0 : i64, scratch_operands = 0 : i64, tpu.core_type = #tpu.core_type<tc>, window_params = [{transform_indices = @transform_0, window_bounds = array<i64: 8, 32>}, {pipeline_mode = #tpu.pipeline_mode<synchronous>, transform_indices = @transform_1, window_bounds = array<i64: 32, 4>}, {pipeline_mode = #tpu.pipeline_mode<synchronous>, transform_indices = @transform_2, window_bounds = array<i64: 1, 4>}, {transform_indices = @transform_3, window_bounds = array<i64: 8, 4>}]} {
    %c0 = arith.constant 0 : index
    %c0_0 = arith.constant 0 : index
    %0 = vector.load %arg1[%c0, %c0_0] : memref<8x32xf32, #tpu.memory_space<vmem>>, vector<8x32xf32>
    %1 = arith.mulf %0, %0 : vector<8x32xf32>
    %cst = arith.constant dense<0.000000e+00> : vector<8xf32>
    %2 = vector.multi_reduction <add>, %1, %cst [1] : vector<8x32xf32> to vector<8xf32>
    %3 = vector.shape_cast %2 : vector<8xf32> to vector<8x1xf32>
    %c0_1 = arith.constant 0 : index
    %c0_2 = arith.constant 0 : index
    %4 = vector.load %arg2[%c0_1, %c0_2] : memref<32x4xf32, #tpu.memory_space<vmem>>, vector<32x4xf32>
    %cst_3 = arith.constant dense<0.000000e+00> : vector<8x4xf32>
    %5 = tpu.matmul %0, %4, %cst_3 {dimension_numbers = #tpu.dot_dimension_numbers<[1], [0], [0], [1], [0, 0, 1, 1], [], []>} : vector<8x32xf32>, vector<32x4xf32>, vector<8x4xf32> -> vector<8x4xf32>
    %c0_4 = arith.constant 0 : index
    %c0_5 = arith.constant 0 : index
    %6 = vector.load %arg3[%c0_4, %c0_5] : memref<1x4xf32, #tpu.memory_space<vmem>>, vector<1x4xf32>
    %7 = vector.broadcast %3 : vector<8x1xf32> to vector<8x4xf32>
    %8 = vector.broadcast %6 : vector<1x4xf32> to vector<8x4xf32>
    %9 = arith.addf %7, %8 : vector<8x4xf32>
    %cst_6 = arith.constant 2.000000e+00 : f32
    %10 = vector.broadcast %cst_6 : f32 to vector<8x4xf32>
    %11 = arith.mulf %10, %5 : vector<8x4xf32>
    %12 = arith.subf %9, %11 : vector<8x4xf32>
    %cst_7 = arith.constant 0.000000e+00 : f32
    %13 = vector.broadcast %cst_7 : f32 to vector<8x4xf32>
    %14 = arith.maximumf %12, %13 : vector<8x4xf32>
    %cst_8 = arith.constant 1.000000e+00 : f32
    %15 = vector.broadcast %cst_8 : f32 to vector<8x4xf32>
    %16 = arith.mulf %14, %15 : vector<8x4xf32>
    %cst_9 = arith.constant 1.000000e+00 : f32
    %17 = vector.broadcast %cst_9 : f32 to vector<8x4xf32>
    %18 = arith.addf %17, %16 : vector<8x4xf32>
    %cst_10 = arith.constant 1.000000e+00 : f32
    %19 = vector.broadcast %cst_10 : f32 to vector<8x4xf32>
    %20 = arith.divf %19, %18 : vector<8x4xf32>
    %cst_11 = arith.constant dense<0.000000e+00> : vector<8xf32>
    %21 = vector.multi_reduction <add>, %20, %cst_11 [1] : vector<8x4xf32> to vector<8xf32>
    %22 = vector.shape_cast %21 : vector<8xf32> to vector<8x1xf32>
    %23 = tpu.reciprocal %22 : vector<8x1xf32> -> vector<8x1xf32>
    %24 = vector.broadcast %23 : vector<8x1xf32> to vector<8x4xf32>
    %25 = arith.mulf %20, %24 : vector<8x4xf32>
    %c0_12 = arith.constant 0 : index
    %c0_13 = arith.constant 0 : index
    %26 = vector.load %arg4[%c0_12, %c0_13] : memref<8x4xf32, #tpu.memory_space<vmem>>, vector<8x4xf32>
    tpu.vector_store %arg4[%c0_12, %c0_13], %25 {strides = array<i32>} : memref<8x4xf32, #tpu.memory_space<vmem>>, vector<8x4xf32>,
    return
  }
  func.func @transform_0(%arg0: i32) -> (i32, i32) {
    %c0_i32 = arith.constant 0 : i32
    %c0_i32_0 = arith.constant 0 : i32
    return %arg0, %c0_i32 : i32, i32
  }
  func.func @transform_1(%arg0: i32) -> (i32, i32) {
    %c0_i32 = arith.constant 0 : i32
    %c0_i32_0 = arith.constant 0 : i32
    %c0_i32_1 = arith.constant 0 : i32
    return %c0_i32, %c0_i32_0 : i32, i32
  }
  func.func @transform_2(%arg0: i32) -> (i32, i32) {
    %c0_i32 = arith.constant 0 : i32
    %c0_i32_0 = arith.constant 0 : i32
    %c0_i32_1 = arith.constant 0 : i32
    return %c0_i32, %c0_i32_0 : i32, i32
  }
  func.func @transform_3(%arg0: i32) -> (i32, i32) {
    %c0_i32 = arith.constant 0 : i32
    %c0_i32_0 = arith.constant 0 : i32
    return %arg0, %c0_i32 : i32, i32
  }
}

</mosaic_0001>

<bundles_post_ra>
// kernel: tpu_custom_call.1
= control target key start
LH: loop header
LB: loop body
LE: loop exit
PB: predicated region body
PF: predicated region fallthrough
CT: control target
= control target key end

     0   :  { %v153_v0 = vmov 0.0|0.0   ;;  %vm154_vm0 = vmmov 0   ;;  %v155_v4 = vmov 0.0   ;;  %vm16_vm1 = vcmask 261120   ;;  %s197_s1 = inlined_call_operand.vmem [shape: f32[32,4], index: 1, kind: input, shape index: {}]   ;;  %s198_s0 = inlined_call_operand.vmem [shape: f32[8,32], index: 0, kind: input, shape index: {}]   ;;  %s199_s2 = inlined_call_operand.vmem [shape: f32[1,4], index: 2, kind: input, shape index: {}]   ;;  %s200_s3 = inlined_call_operand.vmem [shape: f32[8,4], index: 3, kind: output, shape index: {}]  }
   0x1   :  { %140 = vmatprep.subr.bf16.mxu0 %v153_v0  ;;  %v20_v1 = vld [vmem:[%s197_s1] sm:$0xff]  ;;  %v21_v2 = vld [vmem:[%s197_s1 + $0x8] sm:$0xff]  ;;  %v22_v3 = vld [vmem:[%s197_s1 + $0x10] sm:$0xff]  ;;  %137 = vmatprep.mubr.msk.f32.mxu0 %vm154_vm0, %v155_v4  ;;  %vm111_vm2 = vcmask 31744  }
   0x2   :  { %v141_v5 = vpack.c.bf16 %v21_v2, %v20_v1  ;;  %v23_v6 = vld [vmem:[%s197_s1 + $0x18] sm:$0xff]  ;;  %v14_v7 = vld [vmem:[%s198_s0] sm:$0xff] }
   0x3   :  { %v15_v8 = vmul.f32 %v14_v7, %v14_v7  ;;  %v144_v9 = vpack.c.bf16 %v23_v6, %v22_v3  ;;  %v123_v11 = vld [vmem:[%s199_s2] ss:$0 sm:$0xff] }
   0x4   :  { %142 = vmatpush3.bf16.msra.mxu0 %v141_v5 }
   0x5   :  { %143 = vmatprep.subr.bf16.mxu0 %v153_v0  ;;  %v17_v10 = vsel %vm16_vm1, %v15_v8, 0.0 }
   0x6   :  { %18 = vadd.xlane.f32.xlu0 %v17_v10 }
   0x8   :  { %145 = vmatpush3.bf16.msra.mxu0 %v144_v9 }
   0xb   :  { %138 = vmatmul.mubr.msk.f32.vlgmr.msra.gmra.mrb[0].mxu0 %vm16_vm1, %v14_v7 }
  0x93   :  { %v19_v12 = vpop.xlane.xlu0 %18 }
  0x94   :  { %v104_v13 = vadd.f32 %v123_v11, %v19_v12 }
  0xde   :  { %v93_v14 = vpop.f32.mrb[0].mxu0 }
  0xdf   :  { %v105_v15 = vmul.f32 2.0, %v93_v14  ;;  %v139_v16 = vpop.f32.mrb[1].mxu0 }
  0xe1   :  { %v106_v17 = vsub.f32 %v104_v13, %v105_v15 }
  0xe3   :  { %v107_v18 = vmax.f32 %v106_v17, 0.0 }
  0xe5   :  { %v108_v19 = vadd.f32 1.0, %v107_v18 }
  0xe7   :  { %149 = vrcp.f32 %v108_v19 }
  0xf1   :  { %v150_v20 = vpop.eup %149 }
  0xf2   :  { %v112_v21 = vsel %vm111_vm2, %v150_v20, 0.0 }
  0xf3   :  { %113 = vadd.xlane.f32.xlu0 %v112_v21 }
 0x180   :  { %v114_v22 = vpop.xlane.xlu0 %113 }
 0x181   :  { %151 = vrcp.f32 %v114_v22 }
 0x18b   :  { %v152_v23 = vpop.eup %151 }
 0x18c   :  { %v116_v24 = vmul.f32 %v152_v23, %v150_v20 }
 0x18e   :  { %117 = vst.msk [vmem:[%s200_s3] sm:$0xff] %vm111_vm2, %v116_v24 }

</bundles_post_ra>
